<compile_context>
chip_gen: v5e
topology: v5e:2x2
jax: 0.10.0
libtpu: 0.0.40
codegen_flags: <defaults>
</compile_context>

<pallas_src>
import functools
from typing import NamedTuple

import jax
import jax.numpy as jnp
from jax.experimental import pallas as pl
from jax.experimental.pallas import tpu as pltpu

_LANE = 128
_MAX_TILE_B = 1024   # cap so large batches still get >= 4 grid steps
_MIN_GRID_STEPS = 4  # >= 2 per TensorCore on v7x, enables pipelining everywhere


def _round_up(x, m):
    return ((x + m - 1) // m) * m


class PolicyParams(NamedTuple):
    """Kernel-ready parameters (prepared once, reused every forward call)."""
    w1: jax.Array   # (state_dim, H1)   compute dtype
    b1: jax.Array   # (1, H1)           f32
    w2: jax.Array   # (H1, H2)          compute dtype
    b2: jax.Array   # (1, H2)           f32
    w3: jax.Array   # (H2, A_pad)       compute dtype, lane-padded
    b3: jax.Array   # (1, A_pad)        f32, lane-padded
    action_dim: int  # real (unpadded) action dim


def prepare_params(params, compute_dtype=jnp.bfloat16):
    """One-time prep: cast weights, keep biases f32, lane-pad the last layer.

    Done at init / param-update time so the per-call forward issues no extra
    XLA ops besides the pallas_call itself.
    """
    w1, b1, w2, b2, w3, b3 = params
    A = w3.shape[1]
    A_pad = _round_up(A, _LANE)
    if A_pad != A:
        # Zero-padded columns produce tanh(0)=0 and are never written to HBM
        # (the output block is only A columns wide).
        w3 = jnp.pad(w3, ((0, 0), (0, A_pad - A)))
        b3 = jnp.pad(b3, ((0, 0), (0, A_pad - A)))
    return PolicyParams(
        w1=w1.astype(compute_dtype),
        b1=b1.astype(jnp.float32),
        w2=w2.astype(compute_dtype),
        b2=b2.astype(jnp.float32),
        w3=w3.astype(compute_dtype),
        b3=b3.astype(jnp.float32),
        action_dim=A,
    )


def _policy_kernel(x_ref, w1_ref, b1_ref, w2_ref, b2_ref, w3_ref, b3_ref, o_ref):
    # Whole 3-layer MLP fused: h1/h2 never leave VMEM/vregs.
    # Matmuls hit the MXU with f32 accumulation; bias adds + tanh stay f32
    # (safe on v5e, which has no bf16 VPU/EUP).
    f32_weights = w1_ref.dtype == jnp.float32
    prec = jax.lax.Precision.HIGHEST if f32_weights else None

    # In-kernel cast of the f32 states to the weight dtype (free under slack).
    x = x_ref[...].astype(w1_ref.dtype)

    h1 = jnp.tanh(
        jnp.dot(x, w1_ref[...], preferred_element_type=jnp.float32,
                precision=prec) + b1_ref[...]
    )
    h2 = jnp.tanh(
        jnp.dot(h1.astype(w2_ref.dtype), w2_ref[...],
                preferred_element_type=jnp.float32, precision=prec) + b2_ref[...]
    )
    out = jnp.tanh(
        jnp.dot(h2.astype(w3_ref.dtype), w3_ref[...],
                preferred_element_type=jnp.float32, precision=prec) + b3_ref[...]
    )
    # Store only the real action columns: 16x less HBM writeback than the
    # padded 128-lane slab.  Static lane slice within one vreg tile.
    o_ref[...] = out[:, :o_ref.shape[-1]].astype(o_ref.dtype)


def state_independent_policy_forward(states, prepped: PolicyParams, *,
                                     max_tile_b=_MAX_TILE_B,
                                     min_grid_steps=_MIN_GRID_STEPS):
    """states: [B, state_dim] f32 -> actions: [B, action_dim] f32 (tanh-squashed)."""
    w1, b1, w2, b2, w3, b3, A = prepped
    B, state_dim = states.shape
    H1 = w1.shape[1]
    H2 = w2.shape[1]
    A_pad = w3.shape[1]

    # Tile chosen so the grid has >= min_grid_steps steps (pipelining + v7x
    # two-core split) while staying a multiple of 16 (covers f32/bf16 sublane
    # packing) and capped at max_tile_b.
    tile_b = _round_up(max(pl.cdiv(B, min_grid_steps), 1), 16)
    tile_b = max(16, min(max_tile_b, tile_b))
    B_pad = _round_up(B, tile_b)
    if B_pad != B:
        states = jnp.pad(states, ((0, B_pad - B), (0, 0)))

    grid = (B_pad // tile_b,)

    out = pl.pallas_call(
        _policy_kernel,
        out_shape=jax.ShapeDtypeStruct((B_pad, A), jnp.float32),
        grid_spec=pltpu.PrefetchScalarGridSpec(
            num_scalar_prefetch=0,
            grid=grid,
            in_specs=[
                # states tile marches down the batch; weights/biases (~22 KB)
                # use constant index_maps and stay resident in VMEM.
                pl.BlockSpec((tile_b, state_dim), lambda i: (i, 0)),
                pl.BlockSpec((state_dim, H1), lambda i: (0, 0)),
                pl.BlockSpec((1, H1), lambda i: (0, 0)),
                pl.BlockSpec((H1, H2), lambda i: (0, 0)),
                pl.BlockSpec((1, H2), lambda i: (0, 0)),
                pl.BlockSpec((H2, A_pad), lambda i: (0, 0)),
                pl.BlockSpec((1, A_pad), lambda i: (0, 0)),
            ],
            out_specs=pl.BlockSpec((tile_b, A), lambda i: (i, 0)),
        ),
        compiler_params=pltpu.CompilerParams(
            dimension_semantics=("parallel",),  # megacore split on v7x
        ),
    )(states, w1, b1, w2, b2, w3, b3)

    return out[:B]


def init_params(key, state_dim, action_dim, hidden_units=(64, 64)):
    """Deterministic init mimicking nn.Linear default (uniform +/- 1/sqrt(fan_in))."""
    dims = (state_dim,) + tuple(hidden_units) + (action_dim,)
    params = []
    for i in range(len(dims) - 1):
        key, kw, kb = jax.random.split(key, 3)
        bound = 1.0 / jnp.sqrt(dims[i])
        w = jax.random.uniform(kw, (dims[i], dims[i + 1]), jnp.float32, -bound, bound)
        b = jax.random.uniform(kb, (1, dims[i + 1]), jnp.float32, -bound, bound)
        params += [w, b]
    # Note: self.log_stds (zeros(1, action_dim)) is only used in sample /
    # evaluate_log_pi, not in forward(), so it does not enter this kernel.
    return tuple(params)


def reference_forward(states, params):
    w1, b1, w2, b2, w3, b3 = params
    h1 = jnp.tanh(states @ w1 + b1)
    h2 = jnp.tanh(h1 @ w2 + b2)
    return jnp.tanh(h2 @ w3 + b3)


if __name__ == "__main__":
    key = jax.random.PRNGKey(0)
    B, state_dim, action_dim = 8, 16, 8

    key, kx = jax.random.split(key)
    states = jax.random.normal(kx, (B, state_dim), jnp.float32)
    params = init_params(key, state_dim, action_dim, hidden_units=(64, 64))
    ref = reference_forward(states, params)

    # Weight prep is done ONCE per parameter set, not per forward call.
    prepped_f32 = prepare_params(params, compute_dtype=jnp.float32)
    prepped_bf16 = prepare_params(params, compute_dtype=jnp.bfloat16)

    # 1) f32 path (precision=HIGHEST): faithful to the PyTorch f32 module.
    out_f32 = jax.block_until_ready(
        state_independent_policy_forward(states, prepped_f32))
    assert out_f32.shape == (B, action_dim)
    assert jnp.allclose(out_f32, ref, atol=1e-5, rtol=1e-5)

    # 2) bf16 MXU fast path (f32 accumulation / f32 tanh): relaxed tolerance.
    out_bf16 = jax.block_until_ready(
        state_independent_policy_forward(states, prepped_bf16))
    assert out_bf16.shape == (B, action_dim)
    assert jnp.allclose(out_bf16, ref, atol=3e-2)

    # 3) Ragged batch: tile derived from cdiv(B, 4) -> 4 grid steps, tiny pad.
    key, kb = jax.random.split(key)
    states_mid = jax.random.normal(kb, (200, state_dim), jnp.float32)
    out_mid = jax.block_until_ready(
        state_independent_policy_forward(states_mid, prepped_bf16))
    assert out_mid.shape == (200, action_dim)
    assert jnp.allclose(out_mid, reference_forward(states_mid, params), atol=3e-2)

    # 4) Rollout-sized batch: tile_b=1024, grid=(4,) -> pipelined + megacore.
    key, kc = jax.random.split(key)
    states_big = jax.random.normal(kc, (4096, state_dim), jnp.float32)
    out_big = jax.block_until_ready(
        state_independent_policy_forward(states_big, prepped_bf16))
    assert out_big.shape == (4096, action_dim)
    assert jnp.allclose(out_big, reference_forward(states_big, params), atol=3e-2)

    print("KERNEL_OK")
</pallas_src>

<mosaic_0001>
module attributes {stable_mosaic.version = 11 : i64} {
  func.func @_policy_kernel(%arg0: i32, %arg1: memref<16x16xf32, #tpu.memory_space<vmem>>, %arg2: memref<16x64xf32, #tpu.memory_space<vmem>>, %arg3: memref<1x64xf32, #tpu.memory_space<vmem>>, %arg4: memref<64x64xf32, #tpu.memory_space<vmem>>, %arg5: memref<1x64xf32, #tpu.memory_space<vmem>>, %arg6: memref<64x128xf32, #tpu.memory_space<vmem>>, %arg7: memref<1x128xf32, #tpu.memory_space<vmem>>, %arg8: memref<16x8xf32, #tpu.memory_space<vmem>>) attributes {dimension_semantics = [#tpu.dimension_semantics<parallel>], iteration_bounds = array<i64: 1>, scalar_prefetch = 0 : i64, scratch_operands = 0 : i64, tpu.core_type = #tpu.core_type<tc>, window_params = [{transform_indices = @transform_0, window_bounds = array<i64: 16, 16>}, {pipeline_mode = #tpu.pipeline_mode<synchronous>, transform_indices = @transform_1, window_bounds = array<i64: 16, 64>}, {pipeline_mode = #tpu.pipeline_mode<synchronous>, transform_indices = @transform_2, window_bounds = array<i64: 1, 64>}, {pipeline_mode = #tpu.pipeline_mode<synchronous>, transform_indices = @transform_3, window_bounds = array<i64: 64, 64>}, {pipeline_mode = #tpu.pipeline_mode<synchronous>, transform_indices = @transform_4, window_bounds = array<i64: 1, 64>}, {pipeline_mode = #tpu.pipeline_mode<synchronous>, transform_indices = @transform_5, window_bounds = array<i64: 64, 128>}, {pipeline_mode = #tpu.pipeline_mode<synchronous>, transform_indices = @transform_6, window_bounds = array<i64: 1, 128>}, {transform_indices = @transform_7, window_bounds = array<i64: 16, 8>}]} {
    %c0 = arith.constant 0 : index
    %c0_0 = arith.constant 0 : index
    %0 = vector.load %arg1[%c0, %c0_0] : memref<16x16xf32, #tpu.memory_space<vmem>>, vector<16x16xf32>
    %c0_1 = arith.constant 0 : index
    %c0_2 = arith.constant 0 : index
    %1 = vector.load %arg2[%c0_1, %c0_2] : memref<16x64xf32, #tpu.memory_space<vmem>>, vector<16x64xf32>
    %cst = arith.constant dense<0.000000e+00> : vector<16x64xf32>
    %2 = tpu.matmul %0, %1, %cst {dimension_numbers = #tpu.dot_dimension_numbers<[1], [0], [0], [1], [0, 0, 1, 1], [], []>, precision = #tpu.contract_precision<fp32>} : vector<16x16xf32>, vector<16x64xf32>, vector<16x64xf32> -> vector<16x64xf32>
    %c0_3 = arith.constant 0 : index
    %c0_4 = arith.constant 0 : index
    %3 = vector.load %arg3[%c0_3, %c0_4] : memref<1x64xf32, #tpu.memory_space<vmem>>, vector<1x64xf32>
    %4 = vector.broadcast %3 : vector<1x64xf32> to vector<16x64xf32>
    %5 = arith.addf %2, %4 : vector<16x64xf32>
    %6 = math.tanh %5 : vector<16x64xf32>
    %c0_5 = arith.constant 0 : index
    %c0_6 = arith.constant 0 : index
    %7 = vector.load %arg4[%c0_5, %c0_6] : memref<64x64xf32, #tpu.memory_space<vmem>>, vector<64x64xf32>
    %cst_7 = arith.constant dense<0.000000e+00> : vector<16x64xf32>
    %8 = tpu.matmul %6, %7, %cst_7 {dimension_numbers = #tpu.dot_dimension_numbers<[1], [0], [0], [1], [0, 0, 1, 1], [], []>, precision = #tpu.contract_precision<fp32>} : vector<16x64xf32>, vector<64x64xf32>, vector<16x64xf32> -> vector<16x64xf32>
    %c0_8 = arith.constant 0 : index
    %c0_9 = arith.constant 0 : index
    %9 = vector.load %arg5[%c0_8, %c0_9] : memref<1x64xf32, #tpu.memory_space<vmem>>, vector<1x64xf32>
    %10 = vector.broadcast %9 : vector<1x64xf32> to vector<16x64xf32>
    %11 = arith.addf %8, %10 : vector<16x64xf32>
    %12 = math.tanh %11 : vector<16x64xf32>
    %c0_10 = arith.constant 0 : index
    %c0_11 = arith.constant 0 : index
    %13 = vector.load %arg6[%c0_10, %c0_11] : memref<64x128xf32, #tpu.memory_space<vmem>>, vector<64x128xf32>
    %cst_12 = arith.constant dense<0.000000e+00> : vector<16x128xf32>
    %14 = tpu.matmul %12, %13, %cst_12 {dimension_numbers = #tpu.dot_dimension_numbers<[1], [0], [0], [1], [0, 0, 1, 1], [], []>, precision = #tpu.contract_precision<fp32>} : vector<16x64xf32>, vector<64x128xf32>, vector<16x128xf32> -> vector<16x128xf32>
    %c0_13 = arith.constant 0 : index
    %c0_14 = arith.constant 0 : index
    %15 = vector.load %arg7[%c0_13, %c0_14] : memref<1x128xf32, #tpu.memory_space<vmem>>, vector<1x128xf32>
    %16 = vector.broadcast %15 : vector<1x128xf32> to vector<16x128xf32>
    %17 = arith.addf %14, %16 : vector<16x128xf32>
    %18 = math.tanh %17 : vector<16x128xf32>
    %19 = vector.extract_strided_slice %18 {offsets = [0, 0], sizes = [16, 8], strides = [1, 1]} : vector<16x128xf32> to vector<16x8xf32>
    %c0_15 = arith.constant 0 : index
    %c0_16 = arith.constant 0 : index
    %20 = vector.load %arg8[%c0_15, %c0_16] : memref<16x8xf32, #tpu.memory_space<vmem>>, vector<16x8xf32>
    tpu.vector_store %arg8[%c0_15, %c0_16], %19 {strides = array<i32>} : memref<16x8xf32, #tpu.memory_space<vmem>>, vector<16x8xf32>,
    return
  }
  func.func @transform_0(%arg0: i32) -> (i32, i32) {
    %c0_i32 = arith.constant 0 : i32
    %c0_i32_0 = arith.constant 0 : i32
    return %arg0, %c0_i32 : i32, i32
  }
  func.func @transform_1(%arg0: i32) -> (i32, i32) {
    %c0_i32 = arith.constant 0 : i32
    %c0_i32_0 = arith.constant 0 : i32
    %c0_i32_1 = arith.constant 0 : i32
    return %c0_i32, %c0_i32_0 : i32, i32
  }
  func.func @transform_2(%arg0: i32) -> (i32, i32) {
    %c0_i32 = arith.constant 0 : i32
    %c0_i32_0 = arith.constant 0 : i32
    %c0_i32_1 = arith.constant 0 : i32
    return %c0_i32, %c0_i32_0 : i32, i32
  }
  func.func @transform_3(%arg0: i32) -> (i32, i32) {
    %c0_i32 = arith.constant 0 : i32
    %c0_i32_0 = arith.constant 0 : i32
    %c0_i32_1 = arith.constant 0 : i32
    return %c0_i32, %c0_i32_0 : i32, i32
  }
  func.func @transform_4(%arg0: i32) -> (i32, i32) {
    %c0_i32 = arith.constant 0 : i32
    %c0_i32_0 = arith.constant 0 : i32
    %c0_i32_1 = arith.constant 0 : i32
    return %c0_i32, %c0_i32_0 : i32, i32
  }
  func.func @transform_5(%arg0: i32) -> (i32, i32) {
    %c0_i32 = arith.constant 0 : i32
    %c0_i32_0 = arith.constant 0 : i32
    %c0_i32_1 = arith.constant 0 : i32
    return %c0_i32, %c0_i32_0 : i32, i32
  }
  func.func @transform_6(%arg0: i32) -> (i32, i32) {
    %c0_i32 = arith.constant 0 : i32
    %c0_i32_0 = arith.constant 0 : i32
    %c0_i32_1 = arith.constant 0 : i32
    return %c0_i32, %c0_i32_0 : i32, i32
  }
  func.func @transform_7(%arg0: i32) -> (i32, i32) {
    %c0_i32 = arith.constant 0 : i32
    %c0_i32_0 = arith.constant 0 : i32
    return %arg0, %c0_i32 : i32, i32
  }
}

</mosaic_0001>

<bundles_post_ra>
// kernel: tpu_custom_call.1
= control target key start
LH: loop header
LB: loop body
LE: loop exit
PB: predicated region body
PF: predicated region fallthrough
CT: control target
= control target key end

     0   :  { %12 = vsyncpa [#allocation3], 0  ;;  %s1201_s0 = inlined_call_operand.hbm [shape: f32[16,16], index: 0, kind: input, shape index: {}]   ;;  %s1202_s1 = inlined_call_operand.hbm [shape: f32[16,64], index: 1, kind: input, shape index: {}]   ;;  %s1203_s2 = inlined_call_operand.vmem [shape: f32[1,64], index: 2, kind: input, shape index: {}]   ;;  %s1204_s3 = inlined_call_operand.hbm [shape: f32[64,64], index: 3, kind: input, shape index: {}]   ;;  %s1205_s4 = inlined_call_operand.vmem [shape: f32[1,64], index: 4, kind: input, shape index: {}]   ;;  %s1206_s5 = inlined_call_operand.hbm [shape: f32[64,128], index: 5, kind: input, shape index: {}]   ;;  %s1207_s6 = inlined_call_operand.vmem [shape: f32[1,128], index: 6, kind: input, shape index: {}]   ;;  %s1208_s7 = inlined_call_operand.vmem [shape: f32[16,8], index: 7, kind: output, shape index: {}]  }
   0x1   :  { %13 = vsyncpa [#allocation5], 0 }
   0x2   :  { %14 = vsyncpa [#allocation8], 0  ;;  %s32_s26 = sshll.u32 %s1202_s1, 4  ;;  %s1010_s27 = smov [#allocation4]   ;;  %s33_s26 = int_to_ptr.hbm [resolvable:$true] %s32_s26 }
   0x3   :  { %s34_s28 = sshll.u32 %s1010_s27, 4  ;;  %s19_s8 = sshll.u32 %s1201_s0, 4  ;;  %s35_s28 = int_to_ptr.vmem [resolvable:$true] %s34_s28  ;;  %s20_s8 = int_to_ptr.hbm [resolvable:$true] %s19_s8 }
   0x4   :  { %s1011_s9 = smov 128   ;;  %s1012_s10 = smov 8  }
   0x5   :  { %40 = dma.hbm_to_vmem [thread:$0]  %s33_s26, 256, %s35_s28, [#allocation5], %s1011_s9, %s1011_s9, %s1012_s10  }
   0x6   :  { %s1013_s11 = smov [#allocation2]   ;;  %s47_s15 = sshll.u32 %s1204_s3, 4  ;;  %s48_s15 = int_to_ptr.hbm [resolvable:$true] %s47_s15 }
   0x7   :  { %s21_s12 = sshll.u32 %s1013_s11, 4  ;;  %s62_s17 = sshll.u32 %s1206_s5, 4  ;;  %s22_s12 = int_to_ptr.vmem [resolvable:$true] %s21_s12  ;;  %s63_s17 = int_to_ptr.hbm [resolvable:$true] %s62_s17 }
   0x8   :  { %27 = dma.hbm_to_vmem [thread:$0]  %s20_s8, 256, %s22_s12, [#allocation3], %s1011_s9, %s1011_s9, %s1012_s10  }
   0x9   :  { %s1014_s18 = smov [#allocation6]   ;;  %s1015_s0 = smov [#allocation7]  }
   0xa   :  { %s49_s19 = sshll.u32 %s1014_s18, 4  ;;  %s64_s20 = sshll.u32 %s1015_s0, 4  ;;  %s50_s19 = int_to_ptr.vmem [resolvable:$true] %s49_s19  ;;  %s65_s20 = int_to_ptr.vmem [resolvable:$true] %s64_s20 }
   0xb   :  { %55 = dma.hbm_to_vmem [thread:$0]  %s48_s15, 1024, %s50_s19, [#allocation5], %s1011_s9, %s1011_s9, %s1012_s10  }
   0xc   :  { %70 = dma.hbm_to_vmem [thread:$0]  %s63_s17, 1024, %s65_s20, [#allocation8], %s1011_s9, %s1011_s9, %s1012_s10  }
   0xd   :  { %1004 = dma.done.wait [#allocation3], 256  }
   0xe   :  { %1005 = vsyncadd [#allocation3], 4294967040 }
   0xf   :  { %1006 = dma.done.wait [#allocation5], 1280  }
  0x10   :  { %1007 = vsyncadd [#allocation5], 4294966016 }
  0x11   :  { %1008 = dma.done.wait [#allocation8], 1024  }
  0x12   :  { %1009 = vsyncadd [#allocation8], 4294966272  ;;  %vm97_vm0 = vcmask 130048   ;;  %v92_v0 = vld [vmem:[#allocation4 + $0x8] sm:$0xff]  ;;  %v91_v1 = vld [vmem:[#allocation4] sm:$0xff]  ;;  %vm308_vm1 = vcmask 523264  }
  0x13   :  { %v90_v2 = vld [vmem:[#allocation2 + $0x8] sm:$0xff]  ;;  %v118_v3 = vand.u32 4294901760, %v92_v0  ;;  %v120_v4 = vand.u32 4294901760, %v91_v1  ;;  %v89_v6 = vld [vmem:[#allocation2] sm:$0xff]  ;;  %v303_v26 = vld [vmem:[#allocation6 + $0x38] sm:$0xff]  ;;  %vm873_vm2 = vcmask 64512  }
  0x14   :  { %v102_v5 = vsel %vm97_vm0, %v90_v2, 0  ;;  %v99_v8 = vsel %vm97_vm0, %v89_v6, 0  ;;  %v1068_v27 = vand.u32 4294901760, %v303_v26  ;;  %v302_v28 = vld [vmem:[#allocation6 + $0x30] sm:$0xff]  ;;  %v301_v31 = vld [vmem:[#allocation6 + $0x28] sm:$0xff]  ;;  %v300_v35 = vld [vmem:[#allocation6 + $0x20] sm:$0xff] }
  0x15   :  { %v130_v7 = vand.u32 4294901760, %v102_v5  ;;  %883 = vmatpush.msra.mxu2 %v118_v3  ;;  %v154_v9 = vsub.f32 %v92_v0, %v118_v3  ;;  %v160_v10 = vsub.f32 %v91_v1, %v120_v4  ;;  %119 = vmatpush.msra.mxu0 %v118_v3  ;;  %v122_v11 = vand.u32 4294901760, %v99_v8  ;;  %v299_v40 = vld [vmem:[#allocation6 + $0x18] sm:$0xff]  ;;  %v298_v46 = vld [vmem:[#allocation6 + $0x10] sm:$0xff]  ;;  %v297_v52 = vld [vmem:[#allocation6 + $0x8] sm:$0xff] }
  0x16   :  { %v1071_v29 = vsub.f32 %v303_v26, %v1068_v27  ;;  %v1073_v30 = vand.u32 4294901760, %v302_v28  ;;  %v1082_v34 = vand.u32 4294901760, %v301_v31  ;;  %v1094_v39 = vand.u32 4294901760, %v300_v35  ;;  %v296_v58 = vld [vmem:[#allocation6] sm:$0xff] }
  0x17   :  { %v131_v12 = vsub.f32 %v102_v5, %v130_v7  ;;  %884 = vmatpush.msra.mxu2 %v120_v4  ;;  %v155_v13 = vand.u32 4294901760, %v154_v9  ;;  %v161_v14 = vand.u32 4294901760, %v160_v10  ;;  %v123_v15 = vsub.f32 %v99_v8, %v122_v11  ;;  %121 = vmatpush.msra.mxu0 %v120_v4 }
  0x18   :  { %v366_v32 = vand.u32 4294901760, %v1071_v29  ;;  %v1079_v33 = vsub.f32 %v302_v28, %v1073_v30  ;;  %v1091_v38 = vsub.f32 %v301_v31, %v1082_v34  ;;  %v383_v44 = vsub.f32 %v300_v35, %v1094_v39 }
  0x19   :  { %v132_v16 = vand.u32 4294901760, %v131_v12  ;;  %190 = vmatpush.msrb.mxu2 %v154_v9  ;;  %v156_v17 = vsub.f32 %v154_v9, %v155_v13  ;;  %v162_v18 = vsub.f32 %v160_v10, %v161_v14  ;;  %v124_v19 = vand.u32 4294901760, %v123_v15  ;;  %253 = vmatpush.msrb.mxu0 %v155_v13 }
  0x1a   :  { %v367_v36 = vsub.f32 %v1071_v29, %v366_v32  ;;  %v372_v37 = vand.u32 4294901760, %v1079_v33  ;;  %v378_v43 = vand.u32 4294901760, %v1091_v38  ;;  %v1103_v45 = vand.u32 4294901760, %v299_v40 }
  0x1b   :  { %v133_v20 = vsub.f32 %v131_v12, %v132_v16  ;;  %193 = vmatpush.msrb.mxu2 %v160_v10  ;;  %v157_v21 = vand.u32 4294901760, %v156_v17  ;;  %v163_v22 = vand.u32 4294901760, %v162_v18  ;;  %v125_v23 = vsub.f32 %v123_v15, %v124_v19  ;;  %257 = vmatpush.msrb.mxu0 %v161_v14 }
  0x1c   :  { %v368_v41 = vand.u32 4294901760, %v367_v36  ;;  %v373_v42 = vsub.f32 %v1079_v33, %v372_v37  ;;  %v379_v48 = vsub.f32 %v1091_v38, %v378_v43  ;;  %v384_v49 = vand.u32 4294901760, %v383_v44 }
  0x1d   :  { %v134_v24 = vand.u32 4294901760, %v133_v20  ;;  %885 = vmatpush.msra.mxu3 %v157_v21  ;;  %158 = vmatpush.msra.mxu1 %v157_v21  ;;  %v126_v25 = vand.u32 4294901760, %v125_v23  ;;  %v1107_v50 = vand.u32 4294901760, %v298_v46  ;;  %v389_v51 = vsub.f32 %v299_v40, %v1103_v45 }
  0x1e   :  { %v374_v47 = vand.u32 4294901760, %v373_v42  ;;  %v380_v53 = vand.u32 4294901760, %v379_v48  ;;  %v385_v54 = vsub.f32 %v383_v44, %v384_v49  ;;  %v335_v56 = vand.u32 4294901760, %v297_v52 }
  0x1f   :  { %135 = vmatmul.f32.vlgmr.msra.gmra.mxu2 %v134_v24  ;;  %886 = vmatpush.msra.mxu3 %v163_v22  ;;  %v395_v55 = vsub.f32 %v298_v46, %v1107_v50  ;;  %v390_v57 = vand.u32 4294901760, %v389_v51  ;;  %v337_v62 = vand.u32 4294901760, %v296_v58 }
  0x20   :  { %127 = vmatmul.f32.vlgmr.msra.gmra.mxu0 %v126_v25  ;;  %170 = vmatmul.f32.vlgmr.msra.gmra.mxu3 %v130_v7  ;;  %v386_v59 = vand.u32 4294901760, %v385_v54  ;;  %v401_v61 = vsub.f32 %v297_v52, %v335_v56  ;;  %v590_v54 = vld [vmem:[#allocation7 + $0x28] sm:$0xff] }
  0x21   :  { %164 = vmatpush.msra.mxu1 %v163_v22  ;;  %220 = vmatpush.msrb.mxu3 %v118_v3  ;;  %v396_v60 = vand.u32 4294901760, %v395_v55  ;;  %v391_v63 = vsub.f32 %v389_v51, %v390_v57  ;;  %v407_v2 = vsub.f32 %v296_v58, %v337_v62  ;;  %v589_v58 = vld [vmem:[#allocation7 + $0x20] sm:$0xff] }
  0x22   :  { %166 = vmatmul.f32.vlgmr.msra.gmra.mxu1 %v122_v11  ;;  %324 = vmatpush.msra.mxu2 %v1068_v27  ;;  %v402_v1 = vand.u32 4294901760, %v401_v61 }
  0x23   :  { %282 = vmatpush.msrb.mxu1 %v118_v3  ;;  %222 = vmatpush.msrb.mxu3 %v120_v4  ;;  %v397_v0 = vsub.f32 %v395_v55, %v396_v60  ;;  %v392_v3 = vand.u32 4294901760, %v391_v63  ;;  %v408_v6 = vand.u32 4294901760, %v407_v2  ;;  %v588_v63 = vld [vmem:[#allocation7 + $0x18] sm:$0xff] }
  0x24   :  { %431 = vmatpush.msra.mxu0 %v1071_v29  ;;  %326 = vmatpush.msra.mxu2 %v1073_v30  ;;  %v403_v5 = vsub.f32 %v401_v61, %v402_v1 }
  0x25   :  { %284 = vmatpush.msrb.mxu1 %v120_v4  ;;  %369 = vmatpush.msra.mxu3 %v368_v41  ;;  %v398_v4 = vand.u32 4294901760, %v397_v0  ;;  %v409_v8 = vsub.f32 %v407_v2, %v408_v6 }
  0x26   :  { %434 = vmatpush.msra.mxu0 %v1079_v33  ;;  %328 = vmatpush.msra.mxu2 %v1082_v34 }
  0x27   :  { %196 = vmatmul.f32.vlgmr.msrb.gmra.mxu2 %v123_v15  ;;  %473 = vmatpush.msra.mxu1 %v1068_v27  ;;  %v410_v9 = vand.u32 4294901760, %v409_v8 }
  0x28   :  { %259 = vmatmul.f32.vlgmr.msrb.gmra.mxu0 %v122_v11  ;;  %226 = vmatmul.f32.vlgmr.msrb.gmra.mxu3 %v124_v19 }
  0x29   :  { %475 = vmatpush.msra.mxu1 %v1073_v30  ;;  %437 = vmatpush.msra.mxu0 %v1091_v38 }
  0x2a   :  { %286 = vmatmul.f32.vlgmr.msrb.gmra.mxu1 %v122_v11  ;;  %330 = vmatpush.msra.mxu2 %v1094_v39  ;;  %v893_v11 = vld [vmem:[%s1203_s2] ss:$0 sm:$0xff] }
  0x2b   :  { %477 = vmatpush.msra.mxu1 %v1082_v34  ;;  %440 = vmatpush.msra.mxu0 %v383_v44 }
  0x2c   :  { %332 = vmatpush.msra.mxu2 %v1103_v45  ;;  %375 = vmatpush.msra.mxu3 %v374_v47 }
  0x2d   :  { %479 = vmatpush.msra.mxu1 %v1094_v39  ;;  %443 = vmatpush.msra.mxu0 %v389_v51  ;;  %v591_v51 = vld [vmem:[#allocation7 + $0x30] sm:$0xff] }
  0x2e   :  { %381 = vmatpush.msra.mxu3 %v380_v53  ;;  %334 = vmatpush.msra.mxu2 %v1107_v50  ;;  %v1133_v53 = vand.u32 4294901760, %v591_v51 }
  0x2f   :  { %201 = vmatmul.f32.gmra.mxu2 %v131_v12  ;;  %481 = vmatpush.msra.mxu1 %v1103_v45 }
  0x30   :  { %263 = vmatmul.f32.gmra.mxu0 %v130_v7  ;;  %232 = vmatmul.f32.gmra.mxu3 %v132_v16 }
  0x31   :  { %483 = vmatpush.msra.mxu1 %v1107_v50  ;;  %446 = vmatpush.msra.mxu0 %v395_v55 }
  0x32   :  { %290 = vmatmul.f32.gmra.mxu1 %v130_v7  ;;  %387 = vmatpush.msra.mxu3 %v386_v59  ;;  %v404_v7 = vand.u32 4294901760, %v403_v5  ;;  %v587_v5 = vld [vmem:[#allocation7 + $0x10] sm:$0xff] }
  0x33   :  { %485 = vmatpush.msra.mxu1 %v335_v56  ;;  %336 = vmatpush.msra.mxu2 %v335_v56 }
  0x34   :  { %449 = vmatpush.msra.mxu0 %v401_v61  ;;  %393 = vmatpush.msra.mxu3 %v392_v3 }
  0x35   :  { %487 = vmatpush.msra.mxu1 %v337_v62  ;;  %338 = vmatpush.msra.mxu2 %v337_v62 }
  0x36   :  { %452 = vmatpush.msra.mxu0 %v407_v2  ;;  %399 = vmatpush.msra.mxu3 %v398_v4  ;;  %v1165_v4 = vand.u32 4294901760, %v588_v63 }
  0x37   :  { %512 = vmatpush.msrb.mxu2 %v366_v32 }
  0x38   :  { %405 = vmatpush.msra.mxu3 %v404_v7 }
  0x39   :  { %516 = vmatpush.msrb.mxu2 %v372_v37 }
  0x3a   :  { %411 = vmatpush.msra.mxu3 %v410_v9  ;;  %v1169_v9 = vand.u32 4294901760, %v587_v5 }
  0x3b   :  { %520 = vmatpush.msrb.mxu2 %v378_v43 }
  0x3c   :  { %559 = vmatpush.msrb.mxu3 %v1068_v27 }
  0x3d   :  { %524 = vmatpush.msrb.mxu2 %v384_v49  ;;  %v592_v49 = vld [vmem:[#allocation7 + $0x38] sm:$0xff] }
  0x3e   :  { %561 = vmatpush.msrb.mxu3 %v1073_v30 }
  0x3f   :  { %528 = vmatpush.msrb.mxu2 %v390_v57  ;;  %v1142_v57 = vand.u32 4294901760, %v590_v54 }
  0x40   :  { %563 = vmatpush.msrb.mxu3 %v1082_v34 }
  0x41   :  { %532 = vmatpush.msrb.mxu2 %v396_v60  ;;  %v1151_v61 = vsub.f32 %v590_v54, %v1142_v57 }
  0x42   :  { %565 = vmatpush.msrb.mxu3 %v1094_v39 }
  0x43   :  { %536 = vmatpush.msrb.mxu2 %v402_v1  ;;  %v666_v2 = vand.u32 4294901760, %v1151_v61 }
  0x44   :  { %567 = vmatpush.msrb.mxu3 %v1103_v45 }
  0x45   :  { %540 = vmatpush.msrb.mxu2 %v408_v6  ;;  %v667_v7 = vsub.f32 %v1151_v61, %v666_v2 }
  0x46   :  { %569 = vmatpush.msrb.mxu3 %v1107_v50  ;;  %v1128_v50 = vand.u32 4294901760, %v592_v49 }
  0x48   :  { %571 = vmatpush.msrb.mxu3 %v335_v56  ;;  %v1131_v52 = vsub.f32 %v592_v49, %v1128_v50  ;;  %612 = vmatpush.msrb.mxu0 %v1128_v50  ;;  %v1139_v56 = vsub.f32 %v591_v51, %v1133_v53 }
  0x4a   :  { %573 = vmatpush.msrb.mxu3 %v337_v62  ;;  %v654_v55 = vand.u32 4294901760, %v1131_v52  ;;  %614 = vmatpush.msrb.mxu0 %v1133_v53  ;;  %v660_v60 = vand.u32 4294901760, %v1139_v56  ;;  %v1154_v62 = vand.u32 4294901760, %v589_v58 }
  0x4c   :  { %v655_v59 = vsub.f32 %v1131_v52, %v654_v55  ;;  %616 = vmatpush.msrb.mxu0 %v1142_v57  ;;  %v661_v1 = vsub.f32 %v1139_v56, %v660_v60  ;;  %v671_v3 = vsub.f32 %v589_v58, %v1154_v62 }
  0x4e   :  { %v656_v0 = vand.u32 4294901760, %v655_v59  ;;  %618 = vmatpush.msrb.mxu0 %v1154_v62  ;;  %v662_v6 = vand.u32 4294901760, %v661_v1  ;;  %v672_v8 = vand.u32 4294901760, %v671_v3 }
  0x50   :  { %657 = vmatpush.msrb.mxu1 %v656_v0  ;;  %620 = vmatpush.msrb.mxu0 %v1165_v4 }
  0x52   :  { %663 = vmatpush.msrb.mxu1 %v662_v6  ;;  %622 = vmatpush.msrb.mxu0 %v1169_v9 }
  0x9d   :  { %v128_v10 = vpop.f32.mrf.mxu0 }
  0x9e   :  { %v129_v14 = vadd.f32 %v893_v11, %v128_v10  ;;  %v677_v10 = vsub.f32 %v588_v63, %v1165_v4 }
  0x9f   :  { %v167_v13 = vpop.f32.mrf.mxu1 }
  0xa0   :  { %v168_v16 = vadd.f32 %v167_v13, %v129_v14  ;;  %v673_v13 = vsub.f32 %v671_v3, %v672_v8  ;;  %v683_v14 = vsub.f32 %v587_v5, %v1169_v9 }
  0xa2   :  { %v136_v12 = vpop.f32.mrf.mxu2 }
  0xa3   :  { %v171_v15 = vpop.f32.mrf.mxu3  ;;  %v137_v22 = vadd.f32 %v893_v11, %v136_v12  ;;  %v586_v11 = vld [vmem:[#allocation7 + $0x8] sm:$0xff]  ;;  %v668_v12 = vand.u32 4294901760, %v667_v7 }
  0xa5   :  { %v260_v18 = vpop.f32.mrf.mxu0  ;;  %v172_v25 = vadd.f32 %v171_v15, %v137_v22  ;;  %v623_v15 = vand.u32 4294901760, %v586_v11  ;;  %669 = vmatpush.msrb.mxu1 %v668_v12 }
  0xa7   :  { %v287_v21 = vpop.f32.mrf.mxu1  ;;  %624 = vmatpush.msrb.mxu0 %v623_v15 }
  0xaa   :  { %v197_v17 = vpop.f32.mrf.mxu2 }
  0xab   :  { %v198_v19 = vadd.f32 %v197_v17, %v168_v16  ;;  %v227_v20 = vpop.f32.mrf.mxu3  ;;  %v678_v16 = vand.u32 4294901760, %v677_v10  ;;  %v585_v17 = vld [vmem:[#allocation7] sm:$0xff] }
  0xad   :  { %v228_v23 = vadd.f32 %v227_v20, %v198_v19  ;;  %v264_v30 = vpop.f32.mrf.mxu0  ;;  %v684_v19 = vand.u32 4294901760, %v683_v14  ;;  %v689_v20 = vsub.f32 %v586_v11, %v623_v15  ;;  %v679_v22 = vsub.f32 %v677_v10, %v678_v16 }
  0xaf   :  { %v261_v24 = vadd.f32 %v260_v18, %v228_v23  ;;  %v291_v32 = vpop.f32.mrf.mxu1  ;;  %v674_v18 = vand.u32 4294901760, %v673_v13  ;;  %v685_v23 = vsub.f32 %v683_v14, %v684_v19 }
  0xb1   :  { %v288_v26 = vadd.f32 %v287_v21, %v261_v24  ;;  %v625_v21 = vand.u32 4294901760, %v585_v17  ;;  %675 = vmatpush.msrb.mxu1 %v674_v18  ;;  %v690_v24 = vand.u32 4294901760, %v689_v20 }
  0xb2   :  { %v202_v27 = vpop.f32.mrf.mxu2 }
  0xb3   :  { %896 = vtanh.f32 %v288_v26  ;;  %v203_v28 = vadd.f32 %v202_v27, %v172_v25  ;;  %v233_v29 = vpop.f32.mrf.mxu3  ;;  %v695_v25 = vsub.f32 %v585_v17, %v625_v21  ;;  %v680_v26 = vand.u32 4294901760, %v679_v22  ;;  %626 = vmatpush.msrb.mxu0 %v625_v21 }
  0xb4   :  { %v686_v27 = vand.u32 4294901760, %v685_v23 }
  0xb5   :  { %v234_v31 = vadd.f32 %v233_v29, %v203_v28  ;;  %v691_v28 = vsub.f32 %v689_v20, %v690_v24  ;;  %v696_v29 = vand.u32 4294901760, %v695_v25  ;;  %681 = vmatpush.msrb.mxu1 %v680_v26 }
  0xb7   :  { %v265_v33 = vadd.f32 %v264_v30, %v234_v31  ;;  %v692_v30 = vand.u32 4294901760, %v691_v28  ;;  %v697_v31 = vsub.f32 %v695_v25, %v696_v29  ;;  %687 = vmatpush.msrb.mxu1 %v686_v27 }
  0xb9   :  { %v897_v34 = vpop.eup %896  ;;  %v292_v35 = vadd.f32 %v291_v32, %v265_v33  ;;  %v698_v33 = vand.u32 4294901760, %v697_v31  ;;  %693 = vmatpush.msrb.mxu1 %v692_v30 }
  0xba   :  { %v310_v36 = vsel %vm308_vm1, %v897_v34, 0  ;;  %v894_v34 = vld [vmem:[%s1205_s4] ss:$0 sm:$0xff] }
  0xbb   :  { %898 = vtanh.f32 %v292_v35  ;;  %v339_v37 = vand.u32 4294901760, %v310_v36  ;;  %699 = vmatpush.msrb.mxu1 %v698_v33 }
  0xbd   :  { %413 = vmatmul.f32.vlgmr.msra.gmra.mxu3 %v339_v37  ;;  %v340_v38 = vsub.f32 %v310_v36, %v339_v37 }
  0xbe   :  { %761 = vmatpush.msra.mxu3 %v1128_v50 }
  0xbf   :  { %455 = vmatmul.f32.vlgmr.msra.gmra.mxu0 %v340_v38  ;;  %v341_v39 = vand.u32 4294901760, %v340_v38 }
  0xc0   :  { %763 = vmatpush.msra.mxu3 %v1133_v53  ;;  %800 = vmatpush.msra.mxu0 %v654_v55 }
  0xc1   :  { %v899_v40 = vpop.eup %898  ;;  %491 = vmatmul.f32.vlgmr.msra.gmra.mxu1 %v341_v39  ;;  %v342_v41 = vsub.f32 %v340_v38, %v341_v39 }
  0xc2   :  { %v313_v42 = vsel %vm308_vm1, %v899_v40, 0  ;;  %765 = vmatpush.msra.mxu3 %v1142_v57  ;;  %804 = vmatpush.msra.mxu0 %v660_v60 }
  0xc3   :  { %v343_v43 = vand.u32 4294901760, %v342_v41  ;;  %v347_v44 = vand.u32 4294901760, %v313_v42  ;;  %847 = vmatpush.msra.mxu1 %v1128_v50 }
  0xc4   :  { %767 = vmatpush.msra.mxu3 %v1154_v62  ;;  %808 = vmatpush.msra.mxu0 %v666_v2 }
  0xc5   :  { %344 = vmatmul.f32.vlgmr.msra.gmra.mxu2 %v343_v43  ;;  %417 = vmatmul.f32.gmra.mxu3 %v347_v44  ;;  %v348_v45 = vsub.f32 %v313_v42, %v347_v44 }
  0xc6   :  { %719 = vmatpush.msra.mxu2 %v1131_v52  ;;  %769 = vmatpush.msra.mxu3 %v1165_v4 }
  0xc7   :  { %460 = vmatmul.f32.gmra.mxu0 %v348_v45  ;;  %v349_v46 = vand.u32 4294901760, %v348_v45  ;;  %849 = vmatpush.msra.mxu1 %v1133_v53 }
  0xc8   :  { %722 = vmatpush.msra.mxu2 %v1139_v56  ;;  %771 = vmatpush.msra.mxu3 %v1169_v9 }
  0xc9   :  { %497 = vmatmul.f32.gmra.mxu1 %v349_v46  ;;  %v350_v47 = vsub.f32 %v348_v45, %v349_v46  ;;  %812 = vmatpush.msra.mxu0 %v672_v8 }
  0xca   :  { %725 = vmatpush.msra.mxu2 %v1151_v61  ;;  %773 = vmatpush.msra.mxu3 %v623_v15 }
  0xcb   :  { %v351_v48 = vand.u32 4294901760, %v350_v47  ;;  %816 = vmatpush.msra.mxu0 %v678_v16  ;;  %851 = vmatpush.msra.mxu1 %v1142_v57 }
  0xcc   :  { %728 = vmatpush.msra.mxu2 %v671_v3  ;;  %775 = vmatpush.msra.mxu3 %v625_v21 }
  0xcd   :  { %352 = vmatmul.f32.gmra.mxu2 %v351_v48  ;;  %575 = vmatmul.f32.vlgmr.msrb.gmra.mxu3 %v339_v37 }
  0xce   :  { %731 = vmatpush.msra.mxu2 %v677_v10  ;;  %820 = vmatpush.msra.mxu0 %v684_v19 }
  0xcf   :  { %853 = vmatpush.msra.mxu1 %v1154_v62 }
  0xd0   :  { %734 = vmatpush.msra.mxu2 %v683_v14  ;;  %824 = vmatpush.msra.mxu0 %v690_v24 }
  0xd1   :  { %855 = vmatpush.msra.mxu1 %v1165_v4 }
  0xd2   :  { %737 = vmatpush.msra.mxu2 %v689_v20  ;;  %828 = vmatpush.msra.mxu0 %v696_v29 }
  0xd3   :  { %857 = vmatpush.msra.mxu1 %v1169_v9  ;;  %v895_v9 = vld [vmem:[%s1207_s6] ss:$0 sm:$0xff] }
  0xd4   :  { %740 = vmatpush.msra.mxu2 %v695_v25 }
  0xd5   :  { %542 = vmatmul.f32.vlgmr.msrb.gmra.mxu2 %v339_v37  ;;  %579 = vmatmul.f32.gmra.mxu3 %v347_v44 }
  0xd6   :  { %859 = vmatpush.msra.mxu1 %v623_v15 }
  0xd8   :  { %861 = vmatpush.msra.mxu1 %v625_v21 }
  0xdd   :  { %546 = vmatmul.f32.gmra.mxu2 %v347_v44 }
 0x13c   :  { %v456_v39 = vpop.f32.mrf.mxu0 }
 0x13e   :  { %v492_v43 = vpop.f32.mrf.mxu1 }
 0x140   :  { %v414_v32 = vpop.f32.mrf.mxu3 }
 0x144   :  { %v461_v49 = vpop.f32.mrf.mxu0 }
 0x146   :  { %v498_v52 = vpop.f32.mrf.mxu1 }
 0x148   :  { %v345_v35 = vpop.f32.mrf.mxu2  ;;  %v418_v37 = vpop.f32.mrf.mxu3 }
 0x149   :  { %v346_v36 = vadd.f32 %v894_v34, %v345_v35 }
 0x14b   :  { %v415_v38 = vadd.f32 %v414_v32, %v346_v36 }
 0x14d   :  { %v457_v42 = vadd.f32 %v456_v39, %v415_v38 }
 0x14f   :  { %v493_v45 = vadd.f32 %v492_v43, %v457_v42 }
 0x150   :  { %v353_v40 = vpop.f32.mrf.mxu2  ;;  %v576_v46 = vpop.f32.mrf.mxu3 }
 0x151   :  { %v354_v41 = vadd.f32 %v894_v34, %v353_v40 }
 0x153   :  { %v419_v44 = vadd.f32 %v418_v37, %v354_v41 }
 0x155   :  { %v462_v51 = vadd.f32 %v461_v49, %v419_v44 }
 0x157   :  { %v499_v53 = vadd.f32 %v498_v52, %v462_v51 }
 0x158   :  { %v543_v47 = vpop.f32.mrf.mxu2  ;;  %v580_v56 = vpop.f32.mrf.mxu3 }
 0x159   :  { %v544_v48 = vadd.f32 %v543_v47, %v493_v45 }
 0x15b   :  { %v577_v50 = vadd.f32 %v576_v46, %v544_v48 }
 0x15d   :  { %900 = vtanh.f32 %v577_v50 }
 0x160   :  { %v547_v54 = vpop.f32.mrf.mxu2 }
 0x161   :  { %v548_v55 = vadd.f32 %v547_v54, %v499_v53 }
 0x163   :  { %v901_v57 = vpop.eup %900  ;;  %v581_v58 = vadd.f32 %v580_v56, %v548_v55 }
 0x164   :  { %v598_v59 = vsel %vm308_vm1, %v901_v57, 0 }
 0x165   :  { %902 = vtanh.f32 %v581_v58  ;;  %v627_v60 = vand.u32 4294901760, %v598_v59 }
 0x167   :  { %701 = vmatmul.f32.vlgmr.msrb.gmra.mxu1 %v627_v60  ;;  %v628_v61 = vsub.f32 %v598_v59, %v627_v60 }
 0x169   :  { %743 = vmatmul.f32.vlgmr.msra.gmra.mxu2 %v628_v61  ;;  %v629_v62 = vand.u32 4294901760, %v628_v61 }
 0x16b   :  { %v903_v63 = vpop.eup %902  ;;  %779 = vmatmul.f32.vlgmr.msra.gmra.mxu3 %v629_v62  ;;  %v630_v0 = vsub.f32 %v628_v61, %v629_v62 }
 0x16c   :  { %v601_v1 = vsel %vm308_vm1, %v903_v63, 0 }
 0x16d   :  { %v631_v2 = vand.u32 4294901760, %v630_v0  ;;  %v635_v3 = vand.u32 4294901760, %v601_v1 }
 0x16f   :  { %632 = vmatmul.f32.vlgmr.msrb.gmra.mxu0 %v631_v2  ;;  %705 = vmatmul.f32.gmra.mxu1 %v635_v3  ;;  %v636_v4 = vsub.f32 %v601_v1, %v635_v3 }
 0x171   :  { %748 = vmatmul.f32.gmra.mxu2 %v636_v4  ;;  %v637_v5 = vand.u32 4294901760, %v636_v4 }
 0x173   :  { %785 = vmatmul.f32.gmra.mxu3 %v637_v5  ;;  %v638_v6 = vsub.f32 %v636_v4, %v637_v5 }
 0x175   :  { %v639_v7 = vand.u32 4294901760, %v638_v6 }
 0x177   :  { %640 = vmatmul.f32.gmra.mxu0 %v639_v7  ;;  %863 = vmatmul.f32.vlgmr.msra.gmra.mxu1 %v627_v60 }
 0x17f   :  { %830 = vmatmul.f32.vlgmr.msra.gmra.mxu0 %v627_v60  ;;  %867 = vmatmul.f32.gmra.mxu1 %v635_v3 }
 0x187   :  { %834 = vmatmul.f32.gmra.mxu0 %v635_v3 }
 0x1e4   :  { %v702_v8 = vpop.f32.mrf.mxu1 }
 0x1ec   :  { %v633_v10 = vpop.f32.mrf.mxu0  ;;  %v706_v12 = vpop.f32.mrf.mxu1 }
 0x1ed   :  { %v634_v11 = vadd.f32 %v895_v9, %v633_v10  ;;  %v744_v14 = vpop.f32.mrf.mxu2 }
 0x1ee   :  { %v780_v18 = vpop.f32.mrf.mxu3 }
 0x1ef   :  { %v703_v13 = vadd.f32 %v702_v8, %v634_v11 }
 0x1f1   :  { %v745_v16 = vadd.f32 %v744_v14, %v703_v13 }
 0x1f3   :  { %v781_v19 = vadd.f32 %v780_v18, %v745_v16 }
 0x1f4   :  { %v641_v15 = vpop.f32.mrf.mxu0  ;;  %v864_v21 = vpop.f32.mrf.mxu1 }
 0x1f5   :  { %v642_v17 = vadd.f32 %v895_v9, %v641_v15  ;;  %v749_v24 = vpop.f32.mrf.mxu2 }
 0x1f6   :  { %v786_v27 = vpop.f32.mrf.mxu3 }
 0x1f7   :  { %v707_v20 = vadd.f32 %v706_v12, %v642_v17 }
 0x1f9   :  { %v750_v25 = vadd.f32 %v749_v24, %v707_v20 }
 0x1fb   :  { %v787_v28 = vadd.f32 %v786_v27, %v750_v25 }
 0x1fc   :  { %v831_v22 = vpop.f32.mrf.mxu0  ;;  %v868_v31 = vpop.f32.mrf.mxu1 }
 0x1fd   :  { %v832_v23 = vadd.f32 %v831_v22, %v781_v19 }
 0x1ff   :  { %v865_v26 = vadd.f32 %v864_v21, %v832_v23 }
 0x201   :  { %904 = vtanh.f32 %v865_v26 }
 0x204   :  { %v835_v29 = vpop.f32.mrf.mxu0 }
 0x205   :  { %v836_v30 = vadd.f32 %v835_v29, %v787_v28 }
 0x207   :  { %v905_v32 = vpop.eup %904  ;;  %v869_v33 = vadd.f32 %v868_v31, %v836_v30 }
 0x208   :  { %874 = vst.msk [vmem:[%s1208_s7] sm:$0xff] %vm873_vm2, %v905_v32 }
 0x209   :  { %906 = vtanh.f32 %v869_v33 }
 0x20f   :  { %v907_v34 = vpop.eup %906 }
 0x210   :  { %875 = vst.msk [vmem:[%s1208_s7 + $0x8] sm:$0xff] %vm873_vm2, %v907_v34 }
 0x211   :  { %880 = vsyncpa [#allocation3], 1 }
 0x212   :  { %881 = vsyncpa [#allocation5], 1 }
 0x213   :  { %882 = vsyncpa [#allocation8], 1 }

</bundles_post_ra>
